<compile_context>
chip_gen: v7x
topology: tpu7x:2x2x1
jax: 0.10.0
libtpu: 0.0.40
codegen_flags: <defaults>
</compile_context>

<pallas_src>
import jax
import jax.numpy as jnp
from jax import lax
from jax.experimental import pallas as pl
from jax.experimental.pallas import tpu as pltpu

N_INPUT = 4      # CartPole observation dim
N_HIDDEN = 128
N_OUTPUT = 2     # CartPole action dim

_DEFAULT_BLOCK_B = 512   # batch rows per grid step; safe on v5e/v6e/v7x VMEM


def _qnet_kernel(x_ref, w1_ref, b1_ref, w2_ref, b2_ref, q_ref, act_ref):
    # x_ref  : (TB, 4)    activation tile (real features only, no lane padding)
    # w1_ref : (4, 128)   resident across the batch grid
    # b1_ref : (1, 128)
    # w2_ref : (128, 2)
    # b2_ref : (1, 2)
    # q_ref  : (TB, 2)    Q-values
    # act_ref: (TB, 1)    greedy action (argmax over Q), int32
    h = jnp.dot(x_ref[...], w1_ref[...], preferred_element_type=jnp.float32)
    h = jnp.maximum(h + b1_ref[...], 0.0)                              # ReLU
    q = jnp.dot(h, w2_ref[...], preferred_element_type=jnp.float32) + b2_ref[...]
    q_ref[...] = q.astype(q_ref.dtype)

    # Fused argmax (first occurrence of the max, matching torch.argmax).
    col = lax.broadcasted_iota(jnp.int32, q.shape, 1)
    qmax = jnp.max(q, axis=-1, keepdims=True)
    act = jnp.min(jnp.where(q == qmax, col, q.shape[-1]),
                  axis=-1, keepdims=True)
    act_ref[...] = act.astype(jnp.int32)


def pack_params(w1, b1, w2, b2):
    """One-time conversion from PyTorch nn.Linear (out, in) layout to the
    kernel's (in, out) layout.  Done at init so the forward hot path has no
    transpose/reshape ops."""
    return {
        "w1": jnp.asarray(w1, jnp.float32).T,                     # (4, 128)
        "b1": jnp.asarray(b1, jnp.float32).reshape(1, N_HIDDEN),  # (1, 128)
        "w2": jnp.asarray(w2, jnp.float32).T,                     # (128, 2)
        "b2": jnp.asarray(b2, jnp.float32).reshape(1, N_OUTPUT),  # (1, 2)
    }


def _round_up(n, m):
    return (n + m - 1) // m * m


@jax.jit
def qnetwork_forward(params, x):
    """x: (B, 4) float32 -> (q_values (B, 2) float32, actions (B,) int32)."""
    B = x.shape[0]
    tb = min(_DEFAULT_BLOCK_B, _round_up(max(B, 8), 8))   # multiple of 8
    b_pad = _round_up(max(B, 8), tb)
    if b_pad != B:                       # only pads when B isn't tile-aligned
        x = jnp.zeros((b_pad, N_INPUT), x.dtype).at[:B].set(x)

    grid = (b_pad // tb,)

    def _resident(shape):
        # Weight/bias blocks: same block index every grid step -> stay in VMEM.
        return pl.BlockSpec(shape, lambda i: (0, 0))

    q, act = pl.pallas_call(
        _qnet_kernel,
        grid=grid,
        in_specs=[
            pl.BlockSpec((tb, N_INPUT), lambda i: (i, 0)),        # x tile
            _resident((N_INPUT, N_HIDDEN)),                       # W1
            _resident((1, N_HIDDEN)),                             # b1
            _resident((N_HIDDEN, N_OUTPUT)),                      # W2
            _resident((1, N_OUTPUT)),                             # b2
        ],
        out_specs=(
            pl.BlockSpec((tb, N_OUTPUT), lambda i: (i, 0)),       # Q-values
            pl.BlockSpec((tb, 1), lambda i: (i, 0)),              # actions
        ),
        out_shape=(
            jax.ShapeDtypeStruct((b_pad, N_OUTPUT), jnp.float32),
            jax.ShapeDtypeStruct((b_pad, 1), jnp.int32),
        ),
        compiler_params=pltpu.CompilerParams(
            dimension_semantics=("parallel",)),   # dual-TC batch split (v7x)
    )(x, params["w1"], params["b1"], params["w2"], params["b2"])

    if b_pad != B:
        q, act = q[:B], act[:B]
    return q, act[:, 0]


def qnetwork_act(params, obs):
    """Equivalent of Qnetwork.act(): greedy action for one observation."""
    _, action = qnetwork_forward(params, jnp.asarray(obs, jnp.float32)[None, :])
    return action[0]


def _init_params(key):
    # Deterministic init mimicking PyTorch nn.Linear default:
    # U(-1/sqrt(fan_in), 1/sqrt(fan_in)).  PyTorch (out, in) layout.
    k1, k2, k3, k4 = jax.random.split(key, 4)
    bound1 = 1.0 / jnp.sqrt(N_INPUT)
    bound2 = 1.0 / jnp.sqrt(N_HIDDEN)
    w1 = jax.random.uniform(k1, (N_HIDDEN, N_INPUT), jnp.float32, -bound1, bound1)
    b1 = jax.random.uniform(k2, (N_HIDDEN,), jnp.float32, -bound1, bound1)
    w2 = jax.random.uniform(k3, (N_OUTPUT, N_HIDDEN), jnp.float32, -bound2, bound2)
    b2 = jax.random.uniform(k4, (N_OUTPUT,), jnp.float32, -bound2, bound2)
    return w1, b1, w2, b2


if __name__ == "__main__":
    key = jax.random.PRNGKey(0)
    kx, kp = jax.random.split(key)
    batch = 8
    x = jax.random.normal(kx, (batch, N_INPUT), jnp.float32)
    w1, b1, w2, b2 = _init_params(kp)

    params = pack_params(w1, b1, w2, b2)   # layout conversion once, at init

    q_values, actions = qnetwork_forward(params, x)
    jax.block_until_ready((q_values, actions))

    # Pure-JAX reference for correctness.
    ref = jnp.maximum(x @ w1.T + b1, 0.0) @ w2.T + b2
    assert q_values.shape == (batch, N_OUTPUT)
    assert actions.shape == (batch,)
    assert jnp.allclose(q_values, ref, atol=1e-5, rtol=1e-5)
    assert jnp.array_equal(actions, jnp.argmax(q_values, axis=-1))

    # .act() equivalent for a single observation (pads B=1 -> 8 internally).
    a0 = qnetwork_act(params, x[0])
    jax.block_until_ready(a0)
    assert int(a0) == int(actions[0])

    # TODO(synk): gym env interaction, replay buffer and optimizer/training
    # loop from the original script are host-side RL glue, not kernel work.
    print("KERNEL_OK")
</pallas_src>

<mosaic_0001>
module attributes {stable_mosaic.version = 11 : i64} {
  func.func @_qnet_kernel(%arg0: i32, %arg1: memref<8x4xf32, #tpu.memory_space<vmem>>, %arg2: memref<4x128xf32, #tpu.memory_space<vmem>>, %arg3: memref<1x128xf32, #tpu.memory_space<vmem>>, %arg4: memref<128x2xf32, #tpu.memory_space<vmem>>, %arg5: memref<1x2xf32, #tpu.memory_space<vmem>>, %arg6: memref<8x2xf32, #tpu.memory_space<vmem>>, %arg7: memref<8x1xi32, #tpu.memory_space<vmem>>) attributes {dimension_semantics = [#tpu.dimension_semantics<parallel>], iteration_bounds = array<i64: 1>, scalar_prefetch = 0 : i64, scratch_operands = 0 : i64, tpu.core_type = #tpu.core_type<tc>, window_params = [{transform_indices = @transform_0, window_bounds = array<i64: 8, 4>}, {pipeline_mode = #tpu.pipeline_mode<synchronous>, transform_indices = @transform_1, window_bounds = array<i64: 4, 128>}, {pipeline_mode = #tpu.pipeline_mode<synchronous>, transform_indices = @transform_2, window_bounds = array<i64: 1, 128>}, {pipeline_mode = #tpu.pipeline_mode<synchronous>, transform_indices = @transform_3, window_bounds = array<i64: 128, 2>}, {pipeline_mode = #tpu.pipeline_mode<synchronous>, transform_indices = @transform_4, window_bounds = array<i64: 1, 2>}, {transform_indices = @transform_5, window_bounds = array<i64: 8, 2>}, {transform_indices = @transform_6, window_bounds = array<i64: 8, 1>}]} {
    %c0 = arith.constant 0 : index
    %c0_0 = arith.constant 0 : index
    %0 = vector.load %arg1[%c0, %c0_0] : memref<8x4xf32, #tpu.memory_space<vmem>>, vector<8x4xf32>
    %c0_1 = arith.constant 0 : index
    %c0_2 = arith.constant 0 : index
    %1 = vector.load %arg2[%c0_1, %c0_2] : memref<4x128xf32, #tpu.memory_space<vmem>>, vector<4x128xf32>
    %cst = arith.constant dense<0.000000e+00> : vector<8x128xf32>
    %2 = tpu.matmul %0, %1, %cst {dimension_numbers = #tpu.dot_dimension_numbers<[1], [0], [0], [1], [0, 0, 1, 1], [], []>} : vector<8x4xf32>, vector<4x128xf32>, vector<8x128xf32> -> vector<8x128xf32>
    %c0_3 = arith.constant 0 : index
    %c0_4 = arith.constant 0 : index
    %3 = vector.load %arg3[%c0_3, %c0_4] : memref<1x128xf32, #tpu.memory_space<vmem>>, vector<1x128xf32>
    %4 = vector.broadcast %3 : vector<1x128xf32> to vector<8x128xf32>
    %5 = arith.addf %2, %4 : vector<8x128xf32>
    %cst_5 = arith.constant 0.000000e+00 : f32
    %6 = vector.broadcast %cst_5 : f32 to vector<8x128xf32>
    %7 = arith.maximumf %5, %6 : vector<8x128xf32>
    %c0_6 = arith.constant 0 : index
    %c0_7 = arith.constant 0 : index
    %8 = vector.load %arg4[%c0_6, %c0_7] : memref<128x2xf32, #tpu.memory_space<vmem>>, vector<128x2xf32>
    %cst_8 = arith.constant dense<0.000000e+00> : vector<8x2xf32>
    %9 = tpu.matmul %7, %8, %cst_8 {dimension_numbers = #tpu.dot_dimension_numbers<[1], [0], [0], [1], [0, 0, 1, 1], [], []>} : vector<8x128xf32>, vector<128x2xf32>, vector<8x2xf32> -> vector<8x2xf32>
    %c0_9 = arith.constant 0 : index
    %c0_10 = arith.constant 0 : index
    %10 = vector.load %arg5[%c0_9, %c0_10] : memref<1x2xf32, #tpu.memory_space<vmem>>, vector<1x2xf32>
    %11 = vector.broadcast %10 : vector<1x2xf32> to vector<8x2xf32>
    %12 = arith.addf %9, %11 : vector<8x2xf32>
    %c0_11 = arith.constant 0 : index
    %c0_12 = arith.constant 0 : index
    %13 = vector.load %arg6[%c0_11, %c0_12] : memref<8x2xf32, #tpu.memory_space<vmem>>, vector<8x2xf32>
    tpu.vector_store %arg6[%c0_11, %c0_12], %12 {strides = array<i32>} : memref<8x2xf32, #tpu.memory_space<vmem>>, vector<8x2xf32>,
    %14 = tpu.iota {dimensions = array<i32: 1>} : vector<8x2xi32>
    %cst_13 = arith.constant dense<0xFF800000> : vector<8xf32>
    %15 = vector.multi_reduction <maximumf>, %12, %cst_13 [1] : vector<8x2xf32> to vector<8xf32>
    %16 = vector.shape_cast %15 : vector<8xf32> to vector<8x1xf32>
    %17 = vector.broadcast %16 : vector<8x1xf32> to vector<8x2xf32>
    %18 = arith.cmpf oeq, %12, %17 : vector<8x2xf32>
    %c2_i32 = arith.constant 2 : i32
    %19 = vector.broadcast %c2_i32 : i32 to vector<8x2xi32>
    %20 = arith.select %18, %14, %19 : vector<8x2xi1>, vector<8x2xi32>
    %cst_14 = arith.constant dense<2147483647> : vector<8xi32>
    %21 = vector.multi_reduction <minsi>, %20, %cst_14 [1] : vector<8x2xi32> to vector<8xi32>
    %22 = vector.shape_cast %21 : vector<8xi32> to vector<8x1xi32>
    %c0_15 = arith.constant 0 : index
    %c0_16 = arith.constant 0 : index
    %23 = vector.load %arg7[%c0_15, %c0_16] : memref<8x1xi32, #tpu.memory_space<vmem>>, vector<8x1xi32>
    tpu.vector_store %arg7[%c0_15, %c0_16], %22 {strides = array<i32>} : memref<8x1xi32, #tpu.memory_space<vmem>>, vector<8x1xi32>,
    return
  }
  func.func @transform_0(%arg0: i32) -> (i32, i32) {
    %c0_i32 = arith.constant 0 : i32
    %c0_i32_0 = arith.constant 0 : i32
    return %arg0, %c0_i32 : i32, i32
  }
  func.func @transform_1(%arg0: i32) -> (i32, i32) {
    %c0_i32 = arith.constant 0 : i32
    %c0_i32_0 = arith.constant 0 : i32
    %c0_i32_1 = arith.constant 0 : i32
    return %c0_i32, %c0_i32_0 : i32, i32
  }
  func.func @transform_2(%arg0: i32) -> (i32, i32) {
    %c0_i32 = arith.constant 0 : i32
    %c0_i32_0 = arith.constant 0 : i32
    %c0_i32_1 = arith.constant 0 : i32
    return %c0_i32, %c0_i32_0 : i32, i32
  }
  func.func @transform_3(%arg0: i32) -> (i32, i32) {
    %c0_i32 = arith.constant 0 : i32
    %c0_i32_0 = arith.constant 0 : i32
    %c0_i32_1 = arith.constant 0 : i32
    return %c0_i32, %c0_i32_0 : i32, i32
  }
  func.func @transform_4(%arg0: i32) -> (i32, i32) {
    %c0_i32 = arith.constant 0 : i32
    %c0_i32_0 = arith.constant 0 : i32
    %c0_i32_1 = arith.constant 0 : i32
    return %c0_i32, %c0_i32_0 : i32, i32
  }
  func.func @transform_5(%arg0: i32) -> (i32, i32) {
    %c0_i32 = arith.constant 0 : i32
    %c0_i32_0 = arith.constant 0 : i32
    return %arg0, %c0_i32 : i32, i32
  }
  func.func @transform_6(%arg0: i32) -> (i32, i32) {
    %c0_i32 = arith.constant 0 : i32
    %c0_i32_0 = arith.constant 0 : i32
    return %arg0, %c0_i32 : i32, i32
  }
}

</mosaic_0001>

<bundles_post_ra>
// kernel: qnetwork_forward.1
= control target key start
LH: loop header
LB: loop body
LE: loop exit
PB: predicated region body
PF: predicated region fallthrough
CT: control target
= control target key end

     0   :  { %vm35_vm0 = vcmask 1043456   ;;  %vm31_vm1 = vcmask 31744   ;;  %v327_v0 = vmov 0.0   ;;  %vm328_vm2 = vmmov 0   ;;  %s431_s1 = inlined_call_operand.vmem [shape: f32[4,128], index: 1, kind: input, shape index: {}]   ;;  %s432_s0 = inlined_call_operand.vmem [shape: f32[8,4], index: 0, kind: input, shape index: {}]   ;;  %s433_s3 = inlined_call_operand.vmem [shape: f32[128,2], index: 3, kind: input, shape index: {}]   ;;  %s434_s2 = inlined_call_operand.vmem [shape: f32[1,128], index: 2, kind: input, shape index: {}]   ;;  %s435_s4 = inlined_call_operand.vmem [shape: f32[1,2], index: 4, kind: input, shape index: {}]   ;;  %s436_s5 = inlined_call_operand.vmem [shape: f32[8,2], index: 5, kind: output, shape index: {0}]   ;;  %s437_s6 = inlined_call_operand.vmem [shape: s32[8,1], index: 6, kind: output, shape index: {1}]  }
   0x1   :  { %260 = vmatprep.subr.mxu0 %v327_v0  ;;  %v23_v1 = vld [vmem:[%s431_s1] sm:$0xf]  ;;  %262 = vmatprep.mubr.msk.f32.mxu0 %vm328_vm2, %v327_v0  ;;  %v329_v4 = vmov 0.0|0.0   ;;  %v111_v5 = vld [vmem:[%s433_s3 + $0x8] sm:$0xff]  ;;  %v112_v6 = vld [vmem:[%s433_s3 + $0x10] sm:$0xff]  ;;  %vm203_vm3 = vcmask 15360   ;;  %v205_v38 = vlaneseq }
   0x2   :  { %v22_v2 = vld [vmem:[%s432_s0] sm:$0xff]  ;;  %261 = vmatpush3.msk.msra.mxu0 %vm35_vm0, %v23_v1  ;;  %300 = vmatprep.subr.bf16.mxu1 %v329_v4  ;;  %v113_v7 = vld [vmem:[%s433_s3 + $0x18] sm:$0xff]  ;;  %v115_v11 = vld [vmem:[%s433_s3 + $0x28] sm:$0xff]  ;;  %vm227_vm6 = vcmask 7168  }
   0x3   :  { %v110_v3 = vld [vmem:[%s433_s3] sm:$0xff]  ;;  %263 = vmatmul.mubr.msk.f32.vlgmr.msra.gmra.mrb[0].mxu0 %vm31_vm1, %v22_v2  ;;  %297 = vmatprep.mubr.msk.f32.mxu1 %vm328_vm2, %v327_v0  ;;  %v304_v9 = vpack.c.bf16 %v113_v7, %v112_v6  ;;  %v116_v13 = vld [vmem:[%s433_s3 + $0x30] sm:$0xff]  ;;  %v117_v14 = vld [vmem:[%s433_s3 + $0x38] sm:$0xff]  ;;  %v206_v39 = vand.u32 127, %v205_v38 }
   0x4   :  { %v301_v8 = vpack.c.bf16 %v111_v5, %v110_v3  ;;  %v114_v10 = vld [vmem:[%s433_s3 + $0x20] sm:$0xff]  ;;  %v310_v15 = vpack.c.bf16 %v117_v14, %v116_v13  ;;  %v119_v17 = vld [vmem:[%s433_s3 + $0x48] sm:$0xff]  ;;  %v120_v19 = vld [vmem:[%s433_s3 + $0x50] sm:$0xff] }
   0x5   :  { %v307_v12 = vpack.c.bf16 %v115_v11, %v114_v10  ;;  %v118_v16 = vld [vmem:[%s433_s3 + $0x40] sm:$0xff]  ;;  %v121_v20 = vld [vmem:[%s433_s3 + $0x58] sm:$0xff]  ;;  %v123_v23 = vld [vmem:[%s433_s3 + $0x68] sm:$0xff] }
   0x6   :  { %302 = vmatpush3.bf16.msra.mxu1 %v301_v8  ;;  %v313_v18 = vpack.c.bf16 %v119_v17, %v118_v16  ;;  %v316_v21 = vpack.c.bf16 %v121_v20, %v120_v19  ;;  %v122_v22 = vld [vmem:[%s433_s3 + $0x60] sm:$0xff]  ;;  %v124_v25 = vld [vmem:[%s433_s3 + $0x70] sm:$0xff]  ;;  %v125_v26 = vld [vmem:[%s433_s3 + $0x78] sm:$0xff] }
   0x7   :  { %303 = vmatprep.subr.bf16.mxu1 %v329_v4  ;;  %v319_v24 = vpack.c.bf16 %v123_v23, %v122_v22  ;;  %v322_v27 = vpack.c.bf16 %v125_v26, %v124_v25  ;;  %v237_v28 = vld [vmem:[%s434_s2] ss:$0 sm:$0xff] }
   0x8   :  { %v240_v33 = vld [vmem:[%s435_s4] ss:$0 sm:$0xff] }
   0xa   :  { %305 = vmatpush3.bf16.msra.mxu1 %v304_v9 }
   0xb   :  { %306 = vmatprep.subr.bf16.mxu1 %v329_v4 }
   0xe   :  { %308 = vmatpush3.bf16.msra.mxu1 %v307_v12 }
   0xf   :  { %309 = vmatprep.subr.bf16.mxu1 %v329_v4 }
  0x12   :  { %311 = vmatpush3.bf16.msra.mxu1 %v310_v15 }
  0x13   :  { %312 = vmatprep.subr.bf16.mxu1 %v329_v4 }
  0x16   :  { %314 = vmatpush3.bf16.msra.mxu1 %v313_v18 }
  0x17   :  { %315 = vmatprep.subr.bf16.mxu1 %v329_v4 }
  0x1a   :  { %317 = vmatpush3.bf16.msra.mxu1 %v316_v21 }
  0x1b   :  { %318 = vmatprep.subr.bf16.mxu1 %v329_v4 }
  0x1e   :  { %320 = vmatpush3.bf16.msra.mxu1 %v319_v24 }
  0x1f   :  { %321 = vmatprep.subr.bf16.mxu1 %v329_v4 }
  0x22   :  { %323 = vmatpush3.bf16.msra.mxu1 %v322_v27 }
  0xd6   :  { %v105_v29 = vpop.f32.mrb[0].mxu0 }
  0xd7   :  { %v106_v30 = vadd.f32 %v237_v28, %v105_v29  ;;  %v264_v31 = vpop.f32.mrb[1].mxu0 }
  0xd9   :  { %v109_v32 = vmax.f32 %v106_v30, 0.0 }
  0xdb   :  { %298 = vmatmul.mubr.f32.vlgmr.msra.gmra.mrb[0].mxu1 %v109_v32 }
 0x1ae   :  { %v199_v34 = vpop.f32.mrb[0].mxu1 }
 0x1af   :  { %v200_v35 = vadd.f32 %v240_v33, %v199_v34  ;;  %v299_v36 = vpop.f32.mrb[1].mxu1 }
 0x1b1   :  { %v207_v37 = vsel %vm203_vm3, %v200_v35, -inf  ;;  %204 = vst.msk [vmem:[%s436_s5] sm:$0xff] %vm203_vm3, %v200_v35 }
 0x1b2   :  { %208 = vmax.xlane.f32.xlu0 %v207_v37 }
 0x23f   :  { %v209_v40 = vpop.xlane.xlu0 %208 }
 0x240   :  { %vm210_vm4 = vcmp.eq.f32.partialorder %v200_v35, %v209_v40 }
 0x241   :  { %v211_v41 = vsel %vm210_vm4, %v206_v39, 2 }
 0x242   :  { %v212_v42 = vsel %vm203_vm3, %v211_v41, 2147483647 }
 0x243   :  { %v214_v43 = vshra.s32 %v212_v42, 16  ;;  %v213_v45 = vand.u32 65535, %v212_v42 }
 0x245   :  { %v216_v44 = vcvt.s32.f32 %v214_v43  ;;  %v215_v47 = vcvt.s32.f32 %v213_v45 }
 0x247   :  { %217 = vmin.xlane.f32.xlu0 %v216_v44 }
 0x2d4   :  { %v218_v46 = vpop.xlane.xlu0 %217 }
 0x2d5   :  { %vm219_vm5 = vcmp.eq.f32.partialorder %v216_v44, %v218_v46  ;;  %v224_v49 = vcvt.f32.s32 %v218_v46 }
 0x2d6   :  { %v220_v48 = vsel %vm219_vm5, %v215_v47, inf }
 0x2d7   :  { %221 = vmin.xlane.f32.xlu1 %v220_v48  ;;  %v225_v51 = vshll.u32 %v224_v49, 16 }
 0x364   :  { %v222_v50 = vpop.xlane.xlu1 %221 }
 0x365   :  { %v223_v52 = vcvt.f32.s32 %v222_v50 }
 0x367   :  { %v226_v53 = vadd.s32 %v225_v51, %v223_v52 }
 0x369   :  { %228 = vst.msk [vmem:[%s437_s6] sm:$0xff] %vm227_vm6, %v226_v53 }

</bundles_post_ra>
